<compile_context>
chip_gen: v6e
topology: v6e:2x2x1
jax: 0.10.0
libtpu: 0.0.40
codegen_flags: <defaults>
</compile_context>

<pallas_src>
import functools
import math

import jax
import jax.numpy as jnp
from jax.experimental import pallas as pl
from jax.experimental.pallas import tpu as pltpu


def _global_pointer_kernel(x_ref, w_ref, b_ref, g_ref, beta_ref, o_ref, qv_ref,
                           *, num_heads, head_size, heads_per_block, eps):
    """One grid step = one batch element x `heads_per_block` heads.

    x_ref    : [1, S, hidden]   compute dtype (bf16)
    w_ref    : [hidden, F]      dense weight, F = 2*H*D, compute dtype
    b_ref    : [1, F]           dense bias (f32)
    g_ref    : [1, F]           LN gamma * rope * (1/sqrt(D) on q cols)  (f32)
    beta_ref : [1, F]           LN beta  * rope * (1/sqrt(D) on q cols)  (f32)
    o_ref    : [1, heads_per_block, S, S]
    qv_ref   : [2*H, S, D]      scratch: per-(head, q/v) slabs of the scaled
                                activations, filled once per batch element.
    """
    D = head_size
    hb = pl.program_id(1)

    # ---- dense projection + LayerNorm: once per batch element ----
    @pl.when(hb == 0)
    def _():
        x = x_ref[0]                                               # [S, hidden]
        proj = jnp.dot(x, w_ref[...],                              # MXU, bf16 in / f32 acc
                       preferred_element_type=jnp.float32) + b_ref[...]
        mean = jnp.mean(proj, axis=-1, keepdims=True)
        var = jnp.mean(jnp.square(proj - mean), axis=-1, keepdims=True)
        normed = (proj - mean) * jax.lax.rsqrt(var + eps)
        # gamma/beta already carry the rope scale and 1/sqrt(D), so no extra
        # elementwise passes are needed here or per head.
        scaled = (normed * g_ref[...] + beta_ref[...]).astype(qv_ref.dtype)  # [S, F]
        # TODO(synk): training-mode Dropout(0.1) (mask + 1/(1-p)) not implemented;
        # forward here matches eval mode (dropout = identity).
        # Re-layout into per-head slabs (static lane slices, once per batch
        # element) so per-head access below is a dynamic *leading-axis* index.
        for k in range(2 * num_heads):            # k=2h -> q_h, k=2h+1 -> v_h
            qv_ref[k] = scaled[:, k * D:(k + 1) * D]

    # ---- per-head scores: (q_h / sqrt(D)) @ v_h^T ----
    for j in range(heads_per_block):
        h_idx = hb * heads_per_block + j
        q = qv_ref[2 * h_idx]                     # [S, D], already * rope / sqrt(D)
        v = qv_ref[2 * h_idx + 1]                 # [S, D], already * rope
        scores = jax.lax.dot_general(             # NT contraction, no materialized v.T
            q, v, dimension_numbers=(((1,), (1,)), ((), ())),
            preferred_element_type=jnp.float32)   # [S, S] f32
        o_ref[0, j] = scores.astype(o_ref.dtype)


def _rope_scale(head_size):
    """emb_cos + trans4tensor * emb_sin  (position-independent, as in __init__)."""
    idx = jnp.arange(0, head_size // 2, dtype=jnp.float32)
    freqs = jnp.power(jnp.float32(10000.0), -2.0 * idx / head_size)
    emb_cos = jnp.repeat(jnp.cos(freqs), 2)
    emb_sin = jnp.repeat(jnp.sin(freqs), 2)
    trans = jnp.tile(jnp.array([-1.0, 1.0], dtype=jnp.float32), head_size // 2)
    return emb_cos + trans * emb_sin


def global_pointer_pallas(x, w, bias, gamma, beta, *, num_heads, head_size,
                          if_rope=True, heads_per_block=1,
                          compute_dtype=jnp.bfloat16, out_dtype=jnp.float32,
                          ln_eps=1e-5):
    """GlobalPointer.forward (eval mode).

    x:            [B, S, hidden]
    w:            [F, hidden]    torch nn.Linear weight layout, F = 2*H*D
    bias/gamma/beta: [F]         Linear bias / LayerNorm affine
    Returns scores [B, num_heads, S, S] = q @ v^T / sqrt(head_size).
    """
    B, S, hidden = x.shape
    H, D = num_heads, head_size
    F = 2 * H * D
    assert w.shape == (F, hidden)
    assert bias.shape == gamma.shape == beta.shape == (F,)
    assert H % heads_per_block == 0

    # Fold the per-feature rope scale and 1/sqrt(D) into the LN affine:
    #   (normed*g + b) * s  ==  normed*(g*s) + (b*s)
    rope = _rope_scale(D) if if_rope else jnp.ones((D,), jnp.float32)
    inv_sqrt_d = 1.0 / math.sqrt(D)
    # per-head column block of 2D: first D (q) get rope/sqrt(D), next D (v) get rope
    scale = jnp.tile(jnp.concatenate([rope * inv_sqrt_d, rope]), H)        # [F]

    x_c = x.astype(compute_dtype)                     # halves input DMA (bf16)
    w_t = w.T.astype(compute_dtype)                   # [hidden, F], bf16 weights
    b2 = bias.reshape(1, F).astype(jnp.float32)
    g2 = (gamma * scale).reshape(1, F).astype(jnp.float32)
    bt2 = (beta * scale).reshape(1, F).astype(jnp.float32)

    kernel = functools.partial(
        _global_pointer_kernel, num_heads=H, head_size=D,
        heads_per_block=heads_per_block, eps=ln_eps)

    def call(single_buffer_constants):
        # W / bias / LN affine have a constant index_map; single-buffering them
        # halves their VMEM footprint (matters most on v7x's 64 MiB).
        const_mode = (dict(pipeline_mode=pl.Buffered(1))
                      if single_buffer_constants else {})
        in_specs = [
            pl.BlockSpec((1, S, hidden), lambda b, h: (b, 0, 0)),
            pl.BlockSpec((hidden, F), lambda b, h: (0, 0), **const_mode),
            pl.BlockSpec((1, F), lambda b, h: (0, 0), **const_mode),
            pl.BlockSpec((1, F), lambda b, h: (0, 0), **const_mode),
            pl.BlockSpec((1, F), lambda b, h: (0, 0), **const_mode),
        ]
        out_specs = pl.BlockSpec((1, heads_per_block, S, S),
                                 lambda b, h: (b, h, 0, 0))
        return pl.pallas_call(
            kernel,
            out_shape=jax.ShapeDtypeStruct((B, H, S, S), out_dtype),
            grid_spec=pltpu.PrefetchScalarGridSpec(
                num_scalar_prefetch=0,
                grid=(B, H // heads_per_block),
                in_specs=in_specs,
                out_specs=out_specs,
                scratch_shapes=[pltpu.VMEM((2 * H, S, D), compute_dtype)],
            ),
            # Head axis must be "arbitrary": heads of a batch element reuse the
            # qv scratch written at head-block 0.  Batch axis is "parallel".
            compiler_params=pltpu.CompilerParams(
                dimension_semantics=("parallel", "arbitrary"),
                vmem_limit_bytes=48 * 1024 * 1024),
        )(x_c, w_t, b2, g2, bt2)

    try:
        return call(True)
    except Exception:
        # pl.Buffered(1) / pipeline_mode not supported by this JAX/Mosaic build:
        # fall back to default double-buffered specs (same semantics).
        return call(False)


def global_pointer_reference(x, w, bias, gamma, beta, *, num_heads, head_size,
                             if_rope=True, ln_eps=1e-5):
    """Pure-JAX f32 mirror of the PyTorch GlobalPointer.forward (eval mode)."""
    D = head_size
    h = jnp.einsum('bsh,fh->bsf', x, w,
                   precision=jax.lax.Precision.HIGHEST) + bias
    mean = h.mean(-1, keepdims=True)
    var = ((h - mean) ** 2).mean(-1, keepdims=True)
    hn = (h - mean) / jnp.sqrt(var + ln_eps) * gamma + beta
    B, S, _ = hn.shape
    hn = hn.reshape(B, S, num_heads, 2 * D).transpose(0, 2, 1, 3)   # [B,H,S,2D]
    q, v = hn[..., :D], hn[..., D:]
    if if_rope:
        idx = jnp.arange(0, D // 2, dtype=jnp.float32)
        freqs = jnp.power(jnp.float32(10000.0), -2.0 * idx / D)
        emb_cos = jnp.repeat(jnp.cos(freqs), 2)
        emb_sin = jnp.repeat(jnp.sin(freqs), 2)
        trans = jnp.tile(jnp.array([-1.0, 1.0], dtype=jnp.float32), D // 2)
        q = q * emb_cos + q * trans * emb_sin
        v = v * emb_cos + v * trans * emb_sin
    scores = jnp.einsum('bhqd,bhkd->bhqk', q, v,
                        precision=jax.lax.Precision.HIGHEST)
    return scores / math.sqrt(D)


if __name__ == "__main__":
    B, S = 2, 8
    hidden_size = 32
    num_heads = 4
    head_size = 16
    if_rope = True
    F = 2 * num_heads * head_size   # 128

    key = jax.random.PRNGKey(0)
    k_x, k_w, k_b, k_g, k_beta = jax.random.split(key, 5)

    x = jax.random.normal(k_x, (B, S, hidden_size), dtype=jnp.float32)

    bound = 1.0 / math.sqrt(hidden_size)
    w = jax.random.uniform(k_w, (F, hidden_size), minval=-bound, maxval=bound,
                           dtype=jnp.float32)         # torch Linear weight layout
    bias = jax.random.uniform(k_b, (F,), minval=-bound, maxval=bound,
                              dtype=jnp.float32)
    gamma = 1.0 + 0.1 * jax.random.normal(k_g, (F,), dtype=jnp.float32)
    beta = 0.1 * jax.random.normal(k_beta, (F,), dtype=jnp.float32)

    ref = jax.block_until_ready(global_pointer_reference(
        x, w, bias, gamma, beta,
        num_heads=num_heads, head_size=head_size, if_rope=if_rope))

    # heads_per_block=1 -> (B, H) grid, small out blocks (v7x-friendly)
    # heads_per_block=H -> (B, 1) grid, one big out block (v5e/v6e-friendly)
    # bf16 compute uses the MXU's fast path; tolerance reflects bf16 inputs on
    # O(1) scores.  f32 compute validates the structure tightly.
    configs = [
        (1, jnp.float32, 5e-2),
        (num_heads, jnp.float32, 5e-2),
        (1, jnp.bfloat16, 1.5e-1),
        (num_heads, jnp.bfloat16, 1.5e-1),
    ]
    for hpb, cdt, tol in configs:
        out = jax.block_until_ready(global_pointer_pallas(
            x, w, bias, gamma, beta,
            num_heads=num_heads, head_size=head_size, if_rope=if_rope,
            heads_per_block=hpb, compute_dtype=cdt))
        assert out.shape == (B, num_heads, S, S), out.shape
        diff = float(jnp.max(jnp.abs(out.astype(jnp.float32) - ref)))
        assert diff <= tol, (
            f"heads_per_block={hpb} compute={jnp.dtype(cdt).name}: "
            f"max abs diff {diff}")

    print("KERNEL_OK")
</pallas_src>

<mosaic_0001>
module attributes {stable_mosaic.version = 11 : i64} {
  func.func @_global_pointer_kernel(%arg0: i32, %arg1: i32, %arg2: memref<1x8x32xf32, #tpu.memory_space<vmem>>, %arg3: memref<32x128xf32, #tpu.memory_space<vmem>>, %arg4: memref<1x128xf32, #tpu.memory_space<vmem>>, %arg5: memref<1x128xf32, #tpu.memory_space<vmem>>, %arg6: memref<1x128xf32, #tpu.memory_space<vmem>>, %arg7: memref<1x1x8x8xf32, #tpu.memory_space<vmem>>, %arg8: memref<8x8x16xf32, #tpu.memory_space<vmem>>) attributes {dimension_semantics = [#tpu.dimension_semantics<parallel>, #tpu.dimension_semantics<arbitrary>], iteration_bounds = array<i64: 2, 4>, scalar_prefetch = 0 : i64, scratch_operands = 1 : i64, tpu.core_type = #tpu.core_type<tc>, window_params = [{transform_indices = @transform_0, window_bounds = array<i64: 1, 8, 32>}, {pipeline_mode = #tpu.pipeline_mode<synchronous>, transform_indices = @transform_1, window_bounds = array<i64: 32, 128>}, {pipeline_mode = #tpu.pipeline_mode<synchronous>, transform_indices = @transform_2, window_bounds = array<i64: 1, 128>}, {pipeline_mode = #tpu.pipeline_mode<synchronous>, transform_indices = @transform_3, window_bounds = array<i64: 1, 128>}, {pipeline_mode = #tpu.pipeline_mode<synchronous>, transform_indices = @transform_4, window_bounds = array<i64: 1, 128>}, {transform_indices = @transform_5, window_bounds = array<i64: 1, 1, 8, 8>}]} {
    %c0_i32 = arith.constant 0 : i32
    %0 = arith.cmpi eq, %arg1, %c0_i32 : i32
    %1 = arith.extui %0 : i1 to i32
    %c0_i32_0 = arith.constant 0 : i32
    %2 = arith.cmpi ne, %1, %c0_i32_0 : i32
    scf.if %2 {
      %c0_11 = arith.constant 0 : index
      %c0_12 = arith.constant 0 : index
      %c0_13 = arith.constant 0 : index
      %18 = vector.load %arg2[%c0_11, %c0_12, %c0_13] : memref<1x8x32xf32, #tpu.memory_space<vmem>>, vector<1x8x32xf32>
      %19 = vector.shape_cast %18 : vector<1x8x32xf32> to vector<8x32xf32>
      %c0_14 = arith.constant 0 : index
      %c0_15 = arith.constant 0 : index
      %20 = vector.load %arg3[%c0_14, %c0_15] : memref<32x128xf32, #tpu.memory_space<vmem>>, vector<32x128xf32>
      %cst_16 = arith.constant dense<0.000000e+00> : vector<8x128xf32>
      %21 = tpu.matmul %19, %20, %cst_16 {dimension_numbers = #tpu.dot_dimension_numbers<[1], [0], [0], [1], [0, 0, 1, 1], [], []>} : vector<8x32xf32>, vector<32x128xf32>, vector<8x128xf32> -> vector<8x128xf32>
      %c0_17 = arith.constant 0 : index
      %c0_18 = arith.constant 0 : index
      %22 = vector.load %arg4[%c0_17, %c0_18] : memref<1x128xf32, #tpu.memory_space<vmem>>, vector<1x128xf32>
      %23 = vector.broadcast %22 : vector<1x128xf32> to vector<8x128xf32>
      %24 = arith.addf %21, %23 : vector<8x128xf32>
      %cst_19 = arith.constant dense<0.000000e+00> : vector<8xf32>
      %25 = vector.multi_reduction <add>, %24, %cst_19 [1] : vector<8x128xf32> to vector<8xf32>
      %26 = vector.shape_cast %25 : vector<8xf32> to vector<8x1xf32>
      %cst_20 = arith.constant 1.280000e+02 : f32
      %27 = vector.broadcast %cst_20 : f32 to vector<8x1xf32>
      %28 = arith.divf %26, %27 : vector<8x1xf32>
      %29 = vector.broadcast %28 : vector<8x1xf32> to vector<8x128xf32>
      %30 = arith.subf %24, %29 : vector<8x128xf32>
      %31 = arith.mulf %30, %30 : vector<8x128xf32>
      %cst_21 = arith.constant dense<0.000000e+00> : vector<8xf32>
      %32 = vector.multi_reduction <add>, %31, %cst_21 [1] : vector<8x128xf32> to vector<8xf32>
      %33 = vector.shape_cast %32 : vector<8xf32> to vector<8x1xf32>
      %cst_22 = arith.constant 1.280000e+02 : f32
      %34 = vector.broadcast %cst_22 : f32 to vector<8x1xf32>
      %35 = arith.divf %33, %34 : vector<8x1xf32>
      %36 = vector.broadcast %28 : vector<8x1xf32> to vector<8x128xf32>
      %37 = arith.subf %24, %36 : vector<8x128xf32>
      %cst_23 = arith.constant 9.99999974E-6 : f32
      %38 = vector.broadcast %cst_23 : f32 to vector<8x1xf32>
      %39 = arith.addf %35, %38 : vector<8x1xf32>
      %40 = math.rsqrt %39 : vector<8x1xf32>
      %41 = vector.broadcast %40 : vector<8x1xf32> to vector<8x128xf32>
      %42 = arith.mulf %37, %41 : vector<8x128xf32>
      %c0_24 = arith.constant 0 : index
      %c0_25 = arith.constant 0 : index
      %43 = vector.load %arg5[%c0_24, %c0_25] : memref<1x128xf32, #tpu.memory_space<vmem>>, vector<1x128xf32>
      %44 = vector.broadcast %43 : vector<1x128xf32> to vector<8x128xf32>
      %45 = arith.mulf %42, %44 : vector<8x128xf32>
      %c0_26 = arith.constant 0 : index
      %c0_27 = arith.constant 0 : index
      %46 = vector.load %arg6[%c0_26, %c0_27] : memref<1x128xf32, #tpu.memory_space<vmem>>, vector<1x128xf32>
      %47 = vector.broadcast %46 : vector<1x128xf32> to vector<8x128xf32>
      %48 = arith.addf %45, %47 : vector<8x128xf32>
      %49 = vector.extract_strided_slice %48 {offsets = [0, 0], sizes = [8, 16], strides = [1, 1]} : vector<8x128xf32> to vector<8x16xf32>
      %c0_28 = arith.constant 0 : index
      %c0_29 = arith.constant 0 : index
      %c0_30 = arith.constant 0 : index
      %50 = vector.load %arg8[%c0_28, %c0_29, %c0_30] : memref<8x8x16xf32, #tpu.memory_space<vmem>>, vector<1x8x16xf32>
      %51 = vector.shape_cast %50 : vector<1x8x16xf32> to vector<8x16xf32>
      %52 = vector.shape_cast %49 : vector<8x16xf32> to vector<1x8x16xf32>
      tpu.vector_store %arg8[%c0_28, %c0_29, %c0_30], %52 {strides = array<i32>} : memref<8x8x16xf32, #tpu.memory_space<vmem>>, vector<1x8x16xf32>,
      %53 = vector.extract_strided_slice %48 {offsets = [0, 16], sizes = [8, 16], strides = [1, 1]} : vector<8x128xf32> to vector<8x16xf32>
      %c1 = arith.constant 1 : index
      %c0_31 = arith.constant 0 : index
      %c0_32 = arith.constant 0 : index
      %54 = vector.load %arg8[%c1, %c0_31, %c0_32] : memref<8x8x16xf32, #tpu.memory_space<vmem>>, vector<1x8x16xf32>
      %55 = vector.shape_cast %54 : vector<1x8x16xf32> to vector<8x16xf32>
      %56 = vector.shape_cast %53 : vector<8x16xf32> to vector<1x8x16xf32>
      tpu.vector_store %arg8[%c1, %c0_31, %c0_32], %56 {strides = array<i32>} : memref<8x8x16xf32, #tpu.memory_space<vmem>>, vector<1x8x16xf32>,
      %57 = vector.extract_strided_slice %48 {offsets = [0, 32], sizes = [8, 16], strides = [1, 1]} : vector<8x128xf32> to vector<8x16xf32>
      %c2 = arith.constant 2 : index
      %c0_33 = arith.constant 0 : index
      %c0_34 = arith.constant 0 : index
      %58 = vector.load %arg8[%c2, %c0_33, %c0_34] : memref<8x8x16xf32, #tpu.memory_space<vmem>>, vector<1x8x16xf32>
      %59 = vector.shape_cast %58 : vector<1x8x16xf32> to vector<8x16xf32>
      %60 = vector.shape_cast %57 : vector<8x16xf32> to vector<1x8x16xf32>
      tpu.vector_store %arg8[%c2, %c0_33, %c0_34], %60 {strides = array<i32>} : memref<8x8x16xf32, #tpu.memory_space<vmem>>, vector<1x8x16xf32>,
      %61 = vector.extract_strided_slice %48 {offsets = [0, 48], sizes = [8, 16], strides = [1, 1]} : vector<8x128xf32> to vector<8x16xf32>
      %c3 = arith.constant 3 : index
      %c0_35 = arith.constant 0 : index
      %c0_36 = arith.constant 0 : index
      %62 = vector.load %arg8[%c3, %c0_35, %c0_36] : memref<8x8x16xf32, #tpu.memory_space<vmem>>, vector<1x8x16xf32>
      %63 = vector.shape_cast %62 : vector<1x8x16xf32> to vector<8x16xf32>
      %64 = vector.shape_cast %61 : vector<8x16xf32> to vector<1x8x16xf32>
      tpu.vector_store %arg8[%c3, %c0_35, %c0_36], %64 {strides = array<i32>} : memref<8x8x16xf32, #tpu.memory_space<vmem>>, vector<1x8x16xf32>,
      %65 = vector.extract_strided_slice %48 {offsets = [0, 64], sizes = [8, 16], strides = [1, 1]} : vector<8x128xf32> to vector<8x16xf32>
      %c4 = arith.constant 4 : index
      %c0_37 = arith.constant 0 : index
      %c0_38 = arith.constant 0 : index
      %66 = vector.load %arg8[%c4, %c0_37, %c0_38] : memref<8x8x16xf32, #tpu.memory_space<vmem>>, vector<1x8x16xf32>
      %67 = vector.shape_cast %66 : vector<1x8x16xf32> to vector<8x16xf32>
      %68 = vector.shape_cast %65 : vector<8x16xf32> to vector<1x8x16xf32>
      tpu.vector_store %arg8[%c4, %c0_37, %c0_38], %68 {strides = array<i32>} : memref<8x8x16xf32, #tpu.memory_space<vmem>>, vector<1x8x16xf32>,
      %69 = vector.extract_strided_slice %48 {offsets = [0, 80], sizes = [8, 16], strides = [1, 1]} : vector<8x128xf32> to vector<8x16xf32>
      %c5 = arith.constant 5 : index
      %c0_39 = arith.constant 0 : index
      %c0_40 = arith.constant 0 : index
      %70 = vector.load %arg8[%c5, %c0_39, %c0_40] : memref<8x8x16xf32, #tpu.memory_space<vmem>>, vector<1x8x16xf32>
      %71 = vector.shape_cast %70 : vector<1x8x16xf32> to vector<8x16xf32>
      %72 = vector.shape_cast %69 : vector<8x16xf32> to vector<1x8x16xf32>
      tpu.vector_store %arg8[%c5, %c0_39, %c0_40], %72 {strides = array<i32>} : memref<8x8x16xf32, #tpu.memory_space<vmem>>, vector<1x8x16xf32>,
      %73 = vector.extract_strided_slice %48 {offsets = [0, 96], sizes = [8, 16], strides = [1, 1]} : vector<8x128xf32> to vector<8x16xf32>
      %c6 = arith.constant 6 : index
      %c0_41 = arith.constant 0 : index
      %c0_42 = arith.constant 0 : index
      %74 = vector.load %arg8[%c6, %c0_41, %c0_42] : memref<8x8x16xf32, #tpu.memory_space<vmem>>, vector<1x8x16xf32>
      %75 = vector.shape_cast %74 : vector<1x8x16xf32> to vector<8x16xf32>
      %76 = vector.shape_cast %73 : vector<8x16xf32> to vector<1x8x16xf32>
      tpu.vector_store %arg8[%c6, %c0_41, %c0_42], %76 {strides = array<i32>} : memref<8x8x16xf32, #tpu.memory_space<vmem>>, vector<1x8x16xf32>,
      %77 = vector.extract_strided_slice %48 {offsets = [0, 112], sizes = [8, 16], strides = [1, 1]} : vector<8x128xf32> to vector<8x16xf32>
      %c7 = arith.constant 7 : index
      %c0_43 = arith.constant 0 : index
      %c0_44 = arith.constant 0 : index
      %78 = vector.load %arg8[%c7, %c0_43, %c0_44] : memref<8x8x16xf32, #tpu.memory_space<vmem>>, vector<1x8x16xf32>
      %79 = vector.shape_cast %78 : vector<1x8x16xf32> to vector<8x16xf32>
      %80 = vector.shape_cast %77 : vector<8x16xf32> to vector<1x8x16xf32>
      tpu.vector_store %arg8[%c7, %c0_43, %c0_44], %80 {strides = array<i32>} : memref<8x8x16xf32, #tpu.memory_space<vmem>>, vector<1x8x16xf32>,
    } else {
    }
    %c1_i32 = arith.constant 1 : i32
    %3 = arith.muli %arg1, %c1_i32 : i32
    %c0_i32_1 = arith.constant 0 : i32
    %4 = arith.addi %3, %c0_i32_1 : i32
    %c2_i32 = arith.constant 2 : i32
    %5 = arith.muli %c2_i32, %4 : i32
    %6 = arith.index_cast %5 : i32 to index
    %c0 = arith.constant 0 : index
    %c0_2 = arith.constant 0 : index
    %7 = vector.load %arg8[%6, %c0, %c0_2] : memref<8x8x16xf32, #tpu.memory_space<vmem>>, vector<1x8x16xf32>
    %8 = vector.shape_cast %7 : vector<1x8x16xf32> to vector<8x16xf32>
    %c2_i32_3 = arith.constant 2 : i32
    %9 = arith.muli %c2_i32_3, %4 : i32
    %c1_i32_4 = arith.constant 1 : i32
    %10 = arith.addi %9, %c1_i32_4 : i32
    %11 = arith.index_cast %10 : i32 to index
    %c0_5 = arith.constant 0 : index
    %c0_6 = arith.constant 0 : index
    %12 = vector.load %arg8[%11, %c0_5, %c0_6] : memref<8x8x16xf32, #tpu.memory_space<vmem>>, vector<1x8x16xf32>
    %13 = vector.shape_cast %12 : vector<1x8x16xf32> to vector<8x16xf32>
    %cst = arith.constant dense<0.000000e+00> : vector<8x8xf32>
    %14 = tpu.matmul %8, %13, %cst {dimension_numbers = #tpu.dot_dimension_numbers<[1], [1], [0], [0], [0, 0, 1, 0], [], []>} : vector<8x16xf32>, vector<8x16xf32>, vector<8x8xf32> -> vector<8x8xf32>
    %c0_7 = arith.constant 0 : index
    %c0_8 = arith.constant 0 : index
    %c0_9 = arith.constant 0 : index
    %c0_10 = arith.constant 0 : index
    %15 = vector.load %arg7[%c0_7, %c0_8, %c0_9, %c0_10] : memref<1x1x8x8xf32, #tpu.memory_space<vmem>>, vector<1x1x8x8xf32>
    %16 = vector.shape_cast %15 : vector<1x1x8x8xf32> to vector<8x8xf32>
    %17 = vector.shape_cast %14 : vector<8x8xf32> to vector<1x1x8x8xf32>
    tpu.vector_store %arg7[%c0_7, %c0_8, %c0_9, %c0_10], %17 {strides = array<i32>} : memref<1x1x8x8xf32, #tpu.memory_space<vmem>>, vector<1x1x8x8xf32>,
    return
  }
  func.func @transform_0(%arg0: i32, %arg1: i32) -> (i32, i32, i32) {
    %c0_i32 = arith.constant 0 : i32
    %c0_i32_0 = arith.constant 0 : i32
    %c0_i32_1 = arith.constant 0 : i32
    return %arg0, %c0_i32, %c0_i32_0 : i32, i32, i32
  }
  func.func @transform_1(%arg0: i32, %arg1: i32) -> (i32, i32) {
    %c0_i32 = arith.constant 0 : i32
    %c0_i32_0 = arith.constant 0 : i32
    %c0_i32_1 = arith.constant 0 : i32
    return %c0_i32, %c0_i32_0 : i32, i32
  }
  func.func @transform_2(%arg0: i32, %arg1: i32) -> (i32, i32) {
    %c0_i32 = arith.constant 0 : i32
    %c0_i32_0 = arith.constant 0 : i32
    %c0_i32_1 = arith.constant 0 : i32
    return %c0_i32, %c0_i32_0 : i32, i32
  }
  func.func @transform_3(%arg0: i32, %arg1: i32) -> (i32, i32) {
    %c0_i32 = arith.constant 0 : i32
    %c0_i32_0 = arith.constant 0 : i32
    %c0_i32_1 = arith.constant 0 : i32
    return %c0_i32, %c0_i32_0 : i32, i32
  }
  func.func @transform_4(%arg0: i32, %arg1: i32) -> (i32, i32) {
    %c0_i32 = arith.constant 0 : i32
    %c0_i32_0 = arith.constant 0 : i32
    %c0_i32_1 = arith.constant 0 : i32
    return %c0_i32, %c0_i32_0 : i32, i32
  }
  func.func @transform_5(%arg0: i32, %arg1: i32) -> (i32, i32, i32, i32) {
    %c0_i32 = arith.constant 0 : i32
    %c0_i32_0 = arith.constant 0 : i32
    %c0_i32_1 = arith.constant 0 : i32
    return %arg0, %arg1, %c0_i32, %c0_i32_0 : i32, i32, i32, i32
  }
}

module attributes {stable_mosaic.version = 11 : i64} {
  func.func @_global_pointer_kernel(%arg0: i32, %arg1: i32, %arg2: memref<1x8x32xf32, #tpu.memory_space<vmem>>, %arg3: memref<32x128xf32, #tpu.memory_space<vmem>>, %arg4: memref<1x128xf32, #tpu.memory_space<vmem>>, %arg5: memref<1x128xf32, #tpu.memory_space<vmem>>, %arg6: memref<1x128xf32, #tpu.memory_space<vmem>>, %arg7: memref<1x1x8x8xf32, #tpu.memory_space<vmem>>, %arg8: memref<8x8x16xf32, #tpu.memory_space<vmem>>) attributes {dimension_semantics = [#tpu.dimension_semantics<parallel>, #tpu.dimension_semantics<arbitrary>], iteration_bounds = array<i64: 2, 4>, scalar_prefetch = 0 : i64, scratch_operands = 1 : i64, tpu.core_type = #tpu.core_type<tc>, window_params = [{transform_indices = @transform_0, window_bounds = array<i64: 1, 8, 32>}, {pipeline_mode = #tpu.pipeline_mode<synchronous>, transform_indices = @transform_1, window_bounds = array<i64: 32, 128>}, {pipeline_mode = #tpu.pipeline_mode<synchronous>, transform_indices = @transform_2, window_bounds = array<i64: 1, 128>}, {pipeline_mode = #tpu.pipeline_mode<synchronous>, transform_indices = @transform_3, window_bounds = array<i64: 1, 128>}, {pipeline_mode = #tpu.pipeline_mode<synchronous>, transform_indices = @transform_4, window_bounds = array<i64: 1, 128>}, {transform_indices = @transform_5, window_bounds = array<i64: 1, 1, 8, 8>}]} {
    %c0_i32 = arith.constant 0 : i32
    %0 = arith.cmpi eq, %arg1, %c0_i32 : i32
    %1 = arith.extui %0 : i1 to i32
    %c0_i32_0 = arith.constant 0 : i32
    %2 = arith.cmpi ne, %1, %c0_i32_0 : i32
    scf.if %2 {
      %c0_11 = arith.constant 0 : index
      %c0_12 = arith.constant 0 : index
      %c0_13 = arith.constant 0 : index
      %18 = vector.load %arg2[%c0_11, %c0_12, %c0_13] : memref<1x8x32xf32, #tpu.memory_space<vmem>>, vector<1x8x32xf32>
      %19 = vector.shape_cast %18 : vector<1x8x32xf32> to vector<8x32xf32>
      %c0_14 = arith.constant 0 : index
      %c0_15 = arith.constant 0 : index
      %20 = vector.load %arg3[%c0_14, %c0_15] : memref<32x128xf32, #tpu.memory_space<vmem>>, vector<32x128xf32>
      %cst_16 = arith.constant dense<0.000000e+00> : vector<8x128xf32>
      %21 = tpu.matmul %19, %20, %cst_16 {dimension_numbers = #tpu.dot_dimension_numbers<[1], [0], [0], [1], [0, 0, 1, 1], [], []>} : vector<8x32xf32>, vector<32x128xf32>, vector<8x128xf32> -> vector<8x128xf32>
      %c0_17 = arith.constant 0 : index
      %c0_18 = arith.constant 0 : index
      %22 = vector.load %arg4[%c0_17, %c0_18] : memref<1x128xf32, #tpu.memory_space<vmem>>, vector<1x128xf32>
      %23 = vector.broadcast %22 : vector<1x128xf32> to vector<8x128xf32>
      %24 = arith.addf %21, %23 : vector<8x128xf32>
      %cst_19 = arith.constant dense<0.000000e+00> : vector<8xf32>
      %25 = vector.multi_reduction <add>, %24, %cst_19 [1] : vector<8x128xf32> to vector<8xf32>
      %26 = vector.shape_cast %25 : vector<8xf32> to vector<8x1xf32>
      %cst_20 = arith.constant 1.280000e+02 : f32
      %27 = vector.broadcast %cst_20 : f32 to vector<8x1xf32>
      %28 = arith.divf %26, %27 : vector<8x1xf32>
      %29 = vector.broadcast %28 : vector<8x1xf32> to vector<8x128xf32>
      %30 = arith.subf %24, %29 : vector<8x128xf32>
      %31 = arith.mulf %30, %30 : vector<8x128xf32>
      %cst_21 = arith.constant dense<0.000000e+00> : vector<8xf32>
      %32 = vector.multi_reduction <add>, %31, %cst_21 [1] : vector<8x128xf32> to vector<8xf32>
      %33 = vector.shape_cast %32 : vector<8xf32> to vector<8x1xf32>
      %cst_22 = arith.constant 1.280000e+02 : f32
      %34 = vector.broadcast %cst_22 : f32 to vector<8x1xf32>
      %35 = arith.divf %33, %34 : vector<8x1xf32>
      %36 = vector.broadcast %28 : vector<8x1xf32> to vector<8x128xf32>
      %37 = arith.subf %24, %36 : vector<8x128xf32>
      %cst_23 = arith.constant 9.99999974E-6 : f32
      %38 = vector.broadcast %cst_23 : f32 to vector<8x1xf32>
      %39 = arith.addf %35, %38 : vector<8x1xf32>
      %40 = math.rsqrt %39 : vector<8x1xf32>
      %41 = vector.broadcast %40 : vector<8x1xf32> to vector<8x128xf32>
      %42 = arith.mulf %37, %41 : vector<8x128xf32>
      %c0_24 = arith.constant 0 : index
      %c0_25 = arith.constant 0 : index
      %43 = vector.load %arg5[%c0_24, %c0_25] : memref<1x128xf32, #tpu.memory_space<vmem>>, vector<1x128xf32>
      %44 = vector.broadcast %43 : vector<1x128xf32> to vector<8x128xf32>
      %45 = arith.mulf %42, %44 : vector<8x128xf32>
      %c0_26 = arith.constant 0 : index
      %c0_27 = arith.constant 0 : index
      %46 = vector.load %arg6[%c0_26, %c0_27] : memref<1x128xf32, #tpu.memory_space<vmem>>, vector<1x128xf32>
      %47 = vector.broadcast %46 : vector<1x128xf32> to vector<8x128xf32>
      %48 = arith.addf %45, %47 : vector<8x128xf32>
      %49 = vector.extract_strided_slice %48 {offsets = [0, 0], sizes = [8, 16], strides = [1, 1]} : vector<8x128xf32> to vector<8x16xf32>
      %c0_28 = arith.constant 0 : index
      %c0_29 = arith.constant 0 : index
      %c0_30 = arith.constant 0 : index
      %50 = vector.load %arg8[%c0_28, %c0_29, %c0_30] : memref<8x8x16xf32, #tpu.memory_space<vmem>>, vector<1x8x16xf32>
      %51 = vector.shape_cast %50 : vector<1x8x16xf32> to vector<8x16xf32>
      %52 = vector.shape_cast %49 : vector<8x16xf32> to vector<1x8x16xf32>
      tpu.vector_store %arg8[%c0_28, %c0_29, %c0_30], %52 {strides = array<i32>} : memref<8x8x16xf32, #tpu.memory_space<vmem>>, vector<1x8x16xf32>,
      %53 = vector.extract_strided_slice %48 {offsets = [0, 16], sizes = [8, 16], strides = [1, 1]} : vector<8x128xf32> to vector<8x16xf32>
      %c1 = arith.constant 1 : index
      %c0_31 = arith.constant 0 : index
      %c0_32 = arith.constant 0 : index
      %54 = vector.load %arg8[%c1, %c0_31, %c0_32] : memref<8x8x16xf32, #tpu.memory_space<vmem>>, vector<1x8x16xf32>
      %55 = vector.shape_cast %54 : vector<1x8x16xf32> to vector<8x16xf32>
      %56 = vector.shape_cast %53 : vector<8x16xf32> to vector<1x8x16xf32>
      tpu.vector_store %arg8[%c1, %c0_31, %c0_32], %56 {strides = array<i32>} : memref<8x8x16xf32, #tpu.memory_space<vmem>>, vector<1x8x16xf32>,
      %57 = vector.extract_strided_slice %48 {offsets = [0, 32], sizes = [8, 16], strides = [1, 1]} : vector<8x128xf32> to vector<8x16xf32>
      %c2 = arith.constant 2 : index
      %c0_33 = arith.constant 0 : index
      %c0_34 = arith.constant 0 : index
      %58 = vector.load %arg8[%c2, %c0_33, %c0_34] : memref<8x8x16xf32, #tpu.memory_space<vmem>>, vector<1x8x16xf32>
      %59 = vector.shape_cast %58 : vector<1x8x16xf32> to vector<8x16xf32>
      %60 = vector.shape_cast %57 : vector<8x16xf32> to vector<1x8x16xf32>
      tpu.vector_store %arg8[%c2, %c0_33, %c0_34], %60 {strides = array<i32>} : memref<8x8x16xf32, #tpu.memory_space<vmem>>, vector<1x8x16xf32>,
      %61 = vector.extract_strided_slice %48 {offsets = [0, 48], sizes = [8, 16], strides = [1, 1]} : vector<8x128xf32> to vector<8x16xf32>
      %c3 = arith.constant 3 : index
      %c0_35 = arith.constant 0 : index
      %c0_36 = arith.constant 0 : index
      %62 = vector.load %arg8[%c3, %c0_35, %c0_36] : memref<8x8x16xf32, #tpu.memory_space<vmem>>, vector<1x8x16xf32>
      %63 = vector.shape_cast %62 : vector<1x8x16xf32> to vector<8x16xf32>
      %64 = vector.shape_cast %61 : vector<8x16xf32> to vector<1x8x16xf32>
      tpu.vector_store %arg8[%c3, %c0_35, %c0_36], %64 {strides = array<i32>} : memref<8x8x16xf32, #tpu.memory_space<vmem>>, vector<1x8x16xf32>,
      %65 = vector.extract_strided_slice %48 {offsets = [0, 64], sizes = [8, 16], strides = [1, 1]} : vector<8x128xf32> to vector<8x16xf32>
      %c4 = arith.constant 4 : index
      %c0_37 = arith.constant 0 : index
      %c0_38 = arith.constant 0 : index
      %66 = vector.load %arg8[%c4, %c0_37, %c0_38] : memref<8x8x16xf32, #tpu.memory_space<vmem>>, vector<1x8x16xf32>
      %67 = vector.shape_cast %66 : vector<1x8x16xf32> to vector<8x16xf32>
      %68 = vector.shape_cast %65 : vector<8x16xf32> to vector<1x8x16xf32>
      tpu.vector_store %arg8[%c4, %c0_37, %c0_38], %68 {strides = array<i32>} : memref<8x8x16xf32, #tpu.memory_space<vmem>>, vector<1x8x16xf32>,
      %69 = vector.extract_strided_slice %48 {offsets = [0, 80], sizes = [8, 16], strides = [1, 1]} : vector<8x128xf32> to vector<8x16xf32>
      %c5 = arith.constant 5 : index
      %c0_39 = arith.constant 0 : index
      %c0_40 = arith.constant 0 : index
      %70 = vector.load %arg8[%c5, %c0_39, %c0_40] : memref<8x8x16xf32, #tpu.memory_space<vmem>>, vector<1x8x16xf32>
      %71 = vector.shape_cast %70 : vector<1x8x16xf32> to vector<8x16xf32>
      %72 = vector.shape_cast %69 : vector<8x16xf32> to vector<1x8x16xf32>
      tpu.vector_store %arg8[%c5, %c0_39, %c0_40], %72 {strides = array<i32>} : memref<8x8x16xf32, #tpu.memory_space<vmem>>, vector<1x8x16xf32>,
      %73 = vector.extract_strided_slice %48 {offsets = [0, 96], sizes = [8, 16], strides = [1, 1]} : vector<8x128xf32> to vector<8x16xf32>
      %c6 = arith.constant 6 : index
      %c0_41 = arith.constant 0 : index
      %c0_42 = arith.constant 0 : index
      %74 = vector.load %arg8[%c6, %c0_41, %c0_42] : memref<8x8x16xf32, #tpu.memory_space<vmem>>, vector<1x8x16xf32>
      %75 = vector.shape_cast %74 : vector<1x8x16xf32> to vector<8x16xf32>
      %76 = vector.shape_cast %73 : vector<8x16xf32> to vector<1x8x16xf32>
      tpu.vector_store %arg8[%c6, %c0_41, %c0_42], %76 {strides = array<i32>} : memref<8x8x16xf32, #tpu.memory_space<vmem>>, vector<1x8x16xf32>,
      %77 = vector.extract_strided_slice %48 {offsets = [0, 112], sizes = [8, 16], strides = [1, 1]} : vector<8x128xf32> to vector<8x16xf32>
      %c7 = arith.constant 7 : index
      %c0_43 = arith.constant 0 : index
      %c0_44 = arith.constant 0 : index
      %78 = vector.load %arg8[%c7, %c0_43, %c0_44] : memref<8x8x16xf32, #tpu.memory_space<vmem>>, vector<1x8x16xf32>
      %79 = vector.shape_cast %78 : vector<1x8x16xf32> to vector<8x16xf32>
      %80 = vector.shape_cast %77 : vector<8x16xf32> to vector<1x8x16xf32>
      tpu.vector_store %arg8[%c7, %c0_43, %c0_44], %80 {strides = array<i32>} : memref<8x8x16xf32, #tpu.memory_space<vmem>>, vector<1x8x16xf32>,
    } else {
    }
    %c1_i32 = arith.constant 1 : i32
    %3 = arith.muli %arg1, %c1_i32 : i32
    %c0_i32_1 = arith.constant 0 : i32
    %4 = arith.addi %3, %c0_i32_1 : i32
    %c2_i32 = arith.constant 2 : i32
    %5 = arith.muli %c2_i32, %4 : i32
    %6 = arith.index_cast %5 : i32 to index
    %c0 = arith.constant 0 : index
    %c0_2 = arith.constant 0 : index
    %7 = vector.load %arg8[%6, %c0, %c0_2] : memref<8x8x16xf32, #tpu.memory_space<vmem>>, vector<1x8x16xf32>
    %8 = vector.shape_cast %7 : vector<1x8x16xf32> to vector<8x16xf32>
    %c2_i32_3 = arith.constant 2 : i32
    %9 = arith.muli %c2_i32_3, %4 : i32
    %c1_i32_4 = arith.constant 1 : i32
    %10 = arith.addi %9, %c1_i32_4 : i32
    %11 = arith.index_cast %10 : i32 to index
    %c0_5 = arith.constant 0 : index
    %c0_6 = arith.constant 0 : index
    %12 = vector.load %arg8[%11, %c0_5, %c0_6] : memref<8x8x16xf32, #tpu.memory_space<vmem>>, vector<1x8x16xf32>
    %13 = vector.shape_cast %12 : vector<1x8x16xf32> to vector<8x16xf32>
    %cst = arith.constant dense<0.000000e+00> : vector<8x8xf32>
    %14 = tpu.matmul %8, %13, %cst {dimension_numbers = #tpu.dot_dimension_numbers<[1], [1], [0], [0], [0, 0, 1, 0], [], []>} : vector<8x16xf32>, vector<8x16xf32>, vector<8x8xf32> -> vector<8x8xf32>
    %c0_7 = arith.constant 0 : index
    %c0_8 = arith.constant 0 : index
    %c0_9 = arith.constant 0 : index
    %c0_10 = arith.constant 0 : index
    %15 = vector.load %arg7[%c0_7, %c0_8, %c0_9, %c0_10] : memref<1x1x8x8xf32, #tpu.memory_space<vmem>>, vector<1x1x8x8xf32>
    %16 = vector.shape_cast %15 : vector<1x1x8x8xf32> to vector<8x8xf32>
    %17 = vector.shape_cast %14 : vector<8x8xf32> to vector<1x1x8x8xf32>
    tpu.vector_store %arg7[%c0_7, %c0_8, %c0_9, %c0_10], %17 {strides = array<i32>} : memref<1x1x8x8xf32, #tpu.memory_space<vmem>>, vector<1x1x8x8xf32>,
    return
  }
  func.func @transform_0(%arg0: i32, %arg1: i32) -> (i32, i32, i32) {
    %c0_i32 = arith.constant 0 : i32
    %c0_i32_0 = arith.constant 0 : i32
    %c0_i32_1 = arith.constant 0 : i32
    return %arg0, %c0_i32, %c0_i32_0 : i32, i32, i32
  }
  func.func @transform_1(%arg0: i32, %arg1: i32) -> (i32, i32) {
    %c0_i32 = arith.constant 0 : i32
    %c0_i32_0 = arith.constant 0 : i32
    %c0_i32_1 = arith.constant 0 : i32
    return %c0_i32, %c0_i32_0 : i32, i32
  }
  func.func @transform_2(%arg0: i32, %arg1: i32) -> (i32, i32) {
    %c0_i32 = arith.constant 0 : i32
    %c0_i32_0 = arith.constant 0 : i32
    %c0_i32_1 = arith.constant 0 : i32
    return %c0_i32, %c0_i32_0 : i32, i32
  }
  func.func @transform_3(%arg0: i32, %arg1: i32) -> (i32, i32) {
    %c0_i32 = arith.constant 0 : i32
    %c0_i32_0 = arith.constant 0 : i32
    %c0_i32_1 = arith.constant 0 : i32
    return %c0_i32, %c0_i32_0 : i32, i32
  }
  func.func @transform_4(%arg0: i32, %arg1: i32) -> (i32, i32) {
    %c0_i32 = arith.constant 0 : i32
    %c0_i32_0 = arith.constant 0 : i32
    %c0_i32_1 = arith.constant 0 : i32
    return %c0_i32, %c0_i32_0 : i32, i32
  }
  func.func @transform_5(%arg0: i32, %arg1: i32) -> (i32, i32, i32, i32) {
    %c0_i32 = arith.constant 0 : i32
    %c0_i32_0 = arith.constant 0 : i32
    %c0_i32_1 = arith.constant 0 : i32
    return %arg0, %arg1, %c0_i32, %c0_i32_0 : i32, i32, i32, i32
  }
}

</mosaic_0001>

<bundles_post_ra>
// kernel: tpu_custom_call.1
= control target key start
LH: loop header
LB: loop body
LE: loop exit
PB: predicated region body
PF: predicated region fallthrough
CT: control target
= control target key end

     0   :  { %s1277_s0 = inlined_call_operand.hbm [shape: f32[2,8,32], index: 0, kind: input, shape index: {}]   ;;  %s1278_s1 = inlined_call_operand.hbm [shape: f32[32,128], index: 1, kind: input, shape index: {}]   ;;  %s1279_s2 = inlined_call_operand.vmem [shape: f32[1,128], index: 2, kind: input, shape index: {}]   ;;  %s1280_s3 = inlined_call_operand.vmem [shape: f32[1,128], index: 3, kind: input, shape index: {}]   ;;  %s1281_s4 = inlined_call_operand.vmem [shape: f32[1,128], index: 4, kind: input, shape index: {}]   ;;  %s1282_s5 = inlined_call_operand.hbm [shape: f32[2,4,8,8], index: 5, kind: output, shape index: {}]  }
   0x1   :  { %1291 = sst [smem:[#allocation18_spill]] %s1278_s1 }
   0x2   :  { %1292 = sst [smem:[#allocation19_spill]] %s1281_s4 }
   0x3   :  { %1293 = sst [smem:[#allocation20_spill]] %s1282_s5 }
   0x4   :  { %10 = vsyncpa [#allocation4], 0 }
   0x5   :  { %12 = vsyncpa [#allocation4 + $0x1], 0 }
   0x6   :  { %13 = vsyncpa [#allocation7], 0 }
   0x7   :  { %14 = vsyncpa [#allocation5], 0 }
   0x8   :  { %16 = vsyncpa [#allocation5 + $0x1], 0  ;;  %s1034_s18 = smov 0   ;;  %s1036_s19 = smov 0  }
   0x9   :  { %s1038_s20 = smov 0   ;;  %s1040_s21 = smov 0  }
   0xa   :  { %s1042_s22 = smov 0   ;;  %s1044_s23 = smov 0  }
   0xb   :  { %s1046_s24 = smov 0   ;;  %s1048_s25 = smov 0  }
   0xc   :  { %s1050_s26 = smov 0   ;;  %s1052_s27 = smov 0  }
   0xd   :  { %s1054_s28 = smov 0  }
   0xe LB: > { %1294 = sst [smem:[#allocation12_spill]] %s946_s18  ;;  %s627_s29 = sadd.s32 4294967295, %s986_s28   ;;  %s986_s28 = sphi %s1054_s28, %s22_s28   ;;  %s982_s27 = sphi %s1052_s27, %s1327_s27   ;;  %s978_s26 = sphi %s1050_s26, %s1319_s26   ;;  %s974_s25 = sphi %s1048_s25, %s1326_s25   ;;  %s970_s24 = sphi %s1046_s24, %s1318_s24   ;;  %s966_s23 = sphi %s1044_s23, %s1325_s23   ;;  %s962_s22 = sphi %s1042_s22, %s1324_s22   ;;  %s958_s21 = sphi %s1040_s21, %s1323_s21   ;;  %s954_s20 = sphi %s1038_s20, %s1322_s20   ;;  %s950_s19 = sphi %s1036_s19, %s1321_s19   ;;  %s946_s18 = sphi %s1034_s18, %s1320_s18  }
   0xf   : > { %1295 = sst [smem:[#allocation13_spill]] %s974_s25  ;;  %s628_s30 = sadd.s32 4294967294, %s986_s28  }
  0x10   : > { %1296 = sst [smem:[#allocation14_spill]] %s978_s26  ;;  %p54_p0 = scmp.ne.s32.totalorder %s962_s22, %s958_s21 }
  0x11   : > { %p1090_p1 = scmp.eq.s32.totalorder %s627_s29, 0  ;;  %p163_p2 = scmp.ne.s32.totalorder %s954_s20, %s950_s19 }
  0x12   : > { %p164_p3 = scmp.eq.s32.totalorder %s627_s29, 7  ;;  %p169_p5 = scmp.ne.s32.totalorder %s950_s19, %s946_s18 }
  0x13   : > { %p1098_p4 = por %p1090_p1, %p54_p0  ;;  %p170_p7 = scmp.eq.s32.totalorder %s628_s30, 7 }
  0x14   : > { %p1104_p6 = por %p164_p3, %p163_p2  ;;  %p629_p8 = scmp.ge.s32.totalorder %s986_s28, 1 }
  0x15   : > { %p177_p9 = scmp.lt.s32.totalorder %s986_s28, 9  ;;  %p1110_p10 = por %p170_p7, %p169_p5 }
  0x16   : > { %s1299_s8 = scalar_select %p1104_p6, 1, 0 }
  0x17   : > { %s1301_s9 = scalar_select %p1110_p10, 1, 0 }
  0x18   : > { %1300 = sst [smem:[#allocation15_spill]] %s1299_s8  ;;  %p1114_p11 = pnand %p629_p8, %p177_p9 }
  0x19   : > { %1302 = sst [smem:[#allocation16_spill]] %s1301_s9  ;;  %s988_s11 = smov [#allocation6]  }
  0x1a   : > { %s189_s12 = sshll.u32 %s988_s11, 4  ;;  %p688_p12 = pneg %p1114_p11  ;;  %s190_s12 = int_to_ptr.vmem [resolvable:$true] %s189_s12 }
  0x1b   : > { %s819_s13 = scalar_lea.vmem %s190_s12, 512  ;;  %p827_p7 = scmp.lt.s32.totalorder %s190_s12, %s190_s12 }
  0x1c   : > { %p689_p13 = pnand %p688_p12, %p1090_p1  ;;  %p820_p2 = scmp.ne.s32.totalorder %s190_s12, %s819_s13 }
  0x1d   : > { %p828_p6 = scmp.lt.s32.totalorder %s819_s13, %s819_s13 }
  0x1e   : > { %p810_p0 = pneg %p689_p13 }
  0x1f   : > { %p829_p10 = por %p828_p6, %p827_p7 }
  0x20   : > { %p822_p3 = pnand %p820_p2, %p810_p0 }
  0x22   : > { %p823_p5 = pneg %p822_p3 }
  0x24   : > { %p830_p8 = pnand %p829_p10, %p823_p5 }
  0x26   : > { %833 = shalt.err (!%p830_p8)
}
  0x27   : > { %s989_s14 = smov 128   ;;  %s990_s15 = smov 8  }
  0x28   : > { %s1304_s1 = sld [smem:[#allocation18_spill]]  ;;  %s31_s21 = sadd.s32 1, %s978_s26 }
  0x29   : > { %s34_s29 = sadd.s32 1, %s982_s27  ;;  %p32_p6 = scmp.ge.s32.totalorder %s31_s21, 4 }
  0x2a   : > { %s41_s30 = sadd.s32 1, %s966_s23  ;;  %p48_p9 = scmp.ne.s32.totalorder %s966_s23, %s962_s22 }
  0x2b   : > { %p49_p10 = scmp.eq.s32.totalorder %s986_s28, 0  ;;  %s1329_s21 = smov (%p32_p6, %s31_s21), 0 }
  0x2c   : > { %1305 = sst [smem:[#allocation17_spill]] %s1329_s21  ;;  %s1331_s29 = smov (!%p32_p6, %s34_s29), %s982_s27 }
  0x2d   : > { %p1134_p12 = por %p49_p10, %p48_p9  ;;  %s149_s13 = ssub.s32 %s978_s26, %s1329_s21 }
  0x2e   : > { %691 = dma.hbm_to_vmem [thread:$0]  (!%p689_p13), %s1304_s1, 512, %s190_s12, [#allocation7], %s989_s14, %s989_s14, %s990_s15  }
  0x2f   : > { %p36_p13 = scmp.ge.s32.totalorder %s1331_s29, 2  ;;  %s153_s12 = sadd.s32 1, %s954_s20 }
  0x30   : > { %p701_p0 = scmp.lt.s32.totalorder %s986_s28, 8  ;;  %s212_s14 = sand.u32 1, %s966_s23  }
  0x31   : > { %s1333_s29 = smov (%p36_p13, %s1331_s29), 0  ;;  %s632_s15 = sshll.u32 %s212_s14, 3 }
  0x32   : > { %s38_s16 = ssub.s32 %s982_s27, %s1333_s29  ;;  %s633_s1 = sshll.u32 %s982_s27, 7 }
  0x33   : > { %p39_p2 = scmp.eq.s32.totalorder %s38_s16, 0  ;;  %s150_s17 = sor.u32 %s149_s13, %s38_s16 }
  0x34   : > { %p151_p3 = scmp.eq.s32.totalorder %s150_s17, 0  ;;  %s221_s5 = scalar_lea.hbm %s1277_s0, %s633_s1 }
  0x35   : > { %s1149_s9 = scalar_select %p39_p2, %s966_s23, %s41_s30  }
  0x36   : > { %s1152_s18 = scalar_select %p151_p3, %s954_s20, %s153_s12  }
  0x37   : > { %s216_s8 = scalar_lea.vmem [#allocation3], %s632_s15  ;;  %p1161_p5 = pnand %p701_p0, %p1134_p12 }
  0x38   : > { %s223_s25 = sshll.u32 %s216_s8, 4  ;;  %s213_s13 = scalar_lea.sflag [#allocation4], %s212_s14  ;;  %s224_s25 = int_to_ptr.vmem [resolvable:$true] %s223_s25 }
  0x39   : > { %p836_p7 = pneg %p1161_p5  ;;  %s847_s30 = scalar_lea.vmem %s224_s25, 128 }
  0x3a   : > { %p848_p8 = scmp.ne.s32.totalorder %s224_s25, %s847_s30  ;;  %s991_s12 = smov [#allocation3]  }
  0x3b   : > { %s852_s26 = sshll.u32 %s991_s12, 4  ;;  %s853_s26 = int_to_ptr.vmem [resolvable:$false] %s852_s26 }
  0x3c   : > { %p850_p6 = pnand %p848_p8, %p836_p7  ;;  %s854_s1 = scalar_lea.vmem %s853_s26, 256 }
  0x3d   : > { %p855_p10 = scmp.lt.s32.totalorder %s224_s25, %s853_s26  ;;  %p856_p13 = scmp.lt.s32.totalorder %s854_s1, %s847_s30 }
  0x3e   : > { %p851_p9 = pneg %p850_p6 }
  0x3f   : > { %p857_p2 = por %p856_p13, %p855_p10 }
  0x41   : > { %p858_p3 = pnand %p857_p2, %p851_p9 }
  0x43   : > { %861 = shalt.err (!%p858_p3)
}
  0x44   : > { %695 = dma.hbm_to_vmem [thread:$0]  (!%p1161_p5), %s221_s5, 128, %s224_s25, %s213_s13  }
  0x45   : > { %232 = sbr.rel (%p1114_p11) target bundleno = 947 (0x3b3), region = 40  ;;  %s234_s8 = sand.u32 (!%p1114_p11), 1, %s962_s22  }
  0x46   : > { %s635_s21 = sshll.u32 (!%p1114_p11), %s234_s8, 3  ;;  %s235_s11 = scalar_lea.sflag (!%p1114_p11), [#allocation4], %s234_s8 }
  0x47   : > { %s238_s14 = scalar_lea.vmem (!%p1114_p11), [#allocation3], %s635_s21 }
  0x4a   : > { %933 = dma.done.wait (%p1098_p4), %s235_s11, 128  }
  0x4b   : > { %935 = vsyncadd (%p1098_p4), %s235_s11, 4294967168 }
  0x4c   : > { %937 = dma.done.wait (%p1090_p1), [#allocation7], 512  }
  0x4d   : > { %939 = vsyncadd (%p1090_p1), [#allocation7], 4294966784  ;;  %s266_s4 = sand.u32 1, %s950_s19   ;;  %p638_p11 = scmp.ne.s32.totalorder %s970_s24, 0 }
  0x4e   : > { %s1183_s5 = sshll.u32 %s266_s4, 3  ;;  %s1308_s13 = sld [smem:[#allocation19_spill]] (!%p638_p11) }
  0x4f   : > { %s268_s25 = scalar_lea.vmem [#allocation8], %s1183_s5  ;;  %272 = sbr.rel (%p638_p11) target bundleno = 730 (0x2da), region = 52 }
  0x50   : > { %s994_s30 = smov (!%p638_p11), 80   ;;  %s995_s12 = smov (!%p638_p11), 112  }
  0x51   : > { %s996_s26 = smov (!%p638_p11), 96   ;;  %s997_s1 = smov (!%p638_p11), 64  }
  0x52   : > { %s998_s8 = smov (!%p638_p11), 48   ;;  %s999_s21 = smov (!%p638_p11), 32  }
  0x53   : > { %s1000_s11 = smov (!%p638_p11), 16  }
  0x54   : > { %v277_v0 = vld [vmem:[#allocation6 + $0x18] sm:$0xff]  ;;  %v992_v1 = vmov 0.0   ;;  %v276_v2 = vld [vmem:[#allocation6 + $0x10] sm:$0xff]  ;;  %vm993_vm0 = vmmov 0   ;;  %v275_v3 = vld [vmem:[#allocation6 + $0x8] sm:$0xff]  ;;  %vm285_vm1 = vcmask 261120  }
  0x55   : > { %664 = vmatprep.subr.mxu0 %v992_v1  ;;  %672 = vmatprep.mubr.msk.f32.mxu0 %vm993_vm0, %v992_v1  ;;  %v274_v4 = vld [vmem:[#allocation6] sm:$0xff]  ;;  %v273_v5 = vld [vmem:[%s238_s14] sm:$0xff]  ;;  %vm387_vm2 = vcmask 130048  }
  0x56   : > { %665 = vmatpush3.msra.mxu0 %v277_v0  ;;  %v639_v6 = vld [vmem:[%s1279_s2] ss:$0 sm:$0xff] }
  0x57   : > { %666 = vmatprep.subr.mxu0 %v992_v1  ;;  %v641_v18 = vld [vmem:[%s1280_s3] ss:$0 sm:$0xff] }
  0x58   : > { %667 = vmatpush3.msra.mxu0 %v276_v2  ;;  %v642_v20 = vld [vmem:[%s1308_s13] ss:$0 sm:$0xff] }
  0x59   : > { %668 = vmatprep.subr.mxu0 %v992_v1 }
  0x5a   : > { %669 = vmatpush3.msra.mxu0 %v275_v3 }
  0x5b   : > { %670 = vmatprep.subr.mxu0 %v992_v1 }
  0x5c   : > { %671 = vmatpush3.msra.mxu0 %v274_v4 }
  0x5d   : > { %673 = vmatmul.mubr.msk.f32.vlgmr.msra.gmra.mxu0 %vm285_vm1, %v273_v5 }
 0x11d   : > { %v355_v7 = vpop.f32.mrf.mxu0 }
 0x11e   : > { %v356_v8 = vadd.f32 %v639_v6, %v355_v7 }
 0x11f   : > { %v674_v9 = vpop.f32.mrf.mxu0 }
 0x120   : > { %359 = vadd.xlane.f32.xlu0 %v356_v8 }
 0x1a9   : > { %v360_v10 = vpop.xlane.xlu0 %359 }
 0x1aa   : > { %v362_v11 = vmul.f32 0.0078125, %v360_v10 }
 0x1ac   : > { %v363_v12 = vsub.f32 %v356_v8, %v362_v11 }
 0x1ae   : > { %v364_v13 = vmul.f32 %v363_v12, %v363_v12 }
 0x1b0   : > { %365 = vadd.xlane.f32.xlu0 %v364_v13 }
 0x239   : > { %v366_v14 = vpop.xlane.xlu0 %365 }
 0x23a   : > { %v367_v15 = vmul.f32 0.0078125, %v366_v14 }
 0x23c   : > { %v368_v16 = vadd.f32 1e-05, %v367_v15 }
 0x23e   : > { %806 = vrsqrt.f32 %v368_v16 }
 0x24b   : > { %v807_v17 = vpop.eup %806 }
 0x24c   : > { %v370_v19 = vmul.f32 %v807_v17, %v363_v12 }
 0x24e   : > { %v378_v21 = vmul.f32 %v641_v18, %v370_v19 }
 0x250   : > { %v386_v22 = vadd.f32 %v642_v20, %v378_v21 }
 0x252   : > { %400 = vrot.lane.b32.xlu0 %v386_v22, %s994_s30  ;;  %390 = vrot.lane.b32.xlu1 %v386_v22, %s995_s12  ;;  %388 = vst.msk [vmem:[#allocation2] sm:$0xff] %vm387_vm2, %v386_v22 }
 0x256   : > { %395 = vrot.lane.b32.xlu1 %v386_v22, %s996_s26 }
 0x25a   : > { %405 = vrot.lane.b32.xlu1 %v386_v22, %s997_s1 }
 0x25e   : > { %410 = vrot.lane.b32.xlu1 %v386_v22, %s998_s8 }
 0x262   : > { %415 = vrot.lane.b32.xlu1 %v386_v22, %s999_s21 }
 0x266   : > { %420 = vrot.lane.b32.xlu1 %v386_v22, %s1000_s11 }
 0x2c4   : > { %v401_v23 = vpop.permute.xlu0 %400  ;;  %v391_v24 = vpop.permute.xlu1 %390 }
 0x2c5   : > { %404 = vst.msk [vmem:[#allocation2 + $0x18] sm:$0xff] %vm387_vm2, %v401_v23  ;;  %394 = vst.msk [vmem:[#allocation2 + $0x8] sm:$0xff] %vm387_vm2, %v391_v24 }
 0x2c8   : > { %v396_v25 = vpop.permute.xlu1 %395 }
 0x2c9   : > { %399 = vst.msk [vmem:[#allocation2 + $0x10] sm:$0xff] %vm387_vm2, %v396_v25 }
 0x2cc   : > { %v406_v26 = vpop.permute.xlu1 %405 }
 0x2cd   : > { %409 = vst.msk [vmem:[#allocation2 + $0x20] sm:$0xff] %vm387_vm2, %v406_v26 }
 0x2d0   : > { %v411_v27 = vpop.permute.xlu1 %410 }
 0x2d1   : > { %414 = vst.msk [vmem:[#allocation2 + $0x28] sm:$0xff] %vm387_vm2, %v411_v27 }
 0x2d4   : > { %v416_v28 = vpop.permute.xlu1 %415 }
 0x2d5   : > { %419 = vst.msk [vmem:[#allocation2 + $0x30] sm:$0xff] %vm387_vm2, %v416_v28 }
 0x2d8   : > { %v421_v29 = vpop.permute.xlu1 %420 }
 0x2d9   : > { %424 = vst.msk [vmem:[#allocation2 + $0x38] sm:$0xff] %vm387_vm2, %v421_v29 }
 0x2da PF: > { %s1309_s14 = sld [smem:[#allocation13_spill]]  ;;  %s655_s6 = sshll.u32 %s970_s24, 4  ;;  %vm433_vm3 = vcmask 130048   ;;  %v1001_v30 = vmov 0.0   ;;  %vm1002_vm4 = vmmov 0   ;;  %vm510_vm5 = vcmask 64512  }
 0x2db   : > { %675 = vmatprep.subr.mxu0 %v1001_v30  ;;  %677 = vmatprep.mubr.msk.f32.mxu0 %vm1002_vm4, %v1001_v30  ;;  %s427_s7 = scalar_lea.vmem [#allocation2], %s655_s6  ;;  %s1310_s10 = sld [smem:[#allocation15_spill]] }
 0x2dc   : > { %s528_s13 = sshll.u32 %s268_s25, 4  ;;  %s1311_s26 = sld [smem:[#allocation20_spill]]  ;;  %s1214_s13 = int_to_ptr.vmem [resolvable:$true] %s528_s13 }
 0x2dd   : > { %s862_s21 = scalar_lea.vmem %s1214_s13, 128  ;;  %s1003_s11 = smov [#allocation8]  }
 0x2de   : > { %p863_p1 = scmp.ne.s32.totalorder %s1214_s13, %s862_s21 }
 0x2e0   : > { %v647_v31 = vld [vmem:[%s427_s7 + $0x8] sm:$0xff]  ;;  %v428_v32 = vld [vmem:[%s427_s7] sm:$0xff]  ;;  %s651_s15 = sshll.u32 %s1309_s14, 2  ;;  %s866_s14 = sshll.u32 %s1003_s11, 4  ;;  %s867_s14 = int_to_ptr.vmem [resolvable:$false] %s866_s14 }
 0x2e1   : > { %676 = vmatpush3.xpose.msk.msra.mxu0 %vm433_vm3, %v647_v31  ;;  %s524_s16 = sadd.s32 %s970_s24, %s651_s15  ;;  %s513_s24 = scalar_lea.sflag [#allocation5], %s266_s4 }
 0x2e2   : > { %s652_s17 = sshll.u32 %s524_s16, 7  ;;  %s1312_s1 = smov %s1311_s26 }
 0x2e3   : > { %s1212_s8 = scalar_lea.hbm %s1311_s26, %s652_s17  ;;  %p1313_p4 = scmp.ne.s32.totalorder %s1310_s10, 0 }
 0x2e4   : > { %678 = vmatmul.mubr.msk.f32.vlgmr.msra.gmra.mxu0 %vm433_vm3, %v428_v32  ;;  %s868_s6 = scalar_lea.vmem %s867_s14, 256  ;;  %p869_p5 = scmp.lt.s32.totalorder %s1214_s13, %s867_s14 }
 0x2e5   : > { %p864_p12 = pnand %p863_p1, %p1313_p4  ;;  %p870_p7 = scmp.lt.s32.totalorder %s868_s6, %s862_s21 }
 0x2e7   : > { %p865_p0 = pneg %p864_p12  ;;  %p871_p8 = por %p870_p7, %p869_p5 }
 0x2e9   : > { %p872_p6 = pnand %p871_p8, %p865_p0 }
 0x3a4   : > { %v506_v33 = vpop.f32.mrf.mxu0 }
 0x3a5   : > { %511 = vst.msk [vmem:[%s268_s25] sm:$0xff] %vm510_vm5, %v506_v33 }
 0x3a6   : > { %v679_v34 = vpop.f32.mrf.mxu0 }
 0x3a7   : > { %875 = shalt.err (!%p872_p6)
}
 0x3a8   : > { %s876_s5 = scalar_lea.hbm %s1212_s8, 128  ;;  %s880_s7 = scalar_lea.hbm %s1312_s1, 1024 }
 0x3a9   : > { %p877_p9 = scmp.ne.s32.totalorder %s1212_s8, %s876_s5  ;;  %p881_p2 = scmp.lt.s32.totalorder %s1212_s8, %s1312_s1 }
 0x3aa   : > { %p882_p3 = scmp.lt.s32.totalorder %s880_s7, %s876_s5 }
 0x3ab   : > { %p878_p10 = pnand %p877_p9, %p1313_p4 }
 0x3ac   : > { %p883_p11 = por %p882_p3, %p881_p2 }
 0x3ad   : > { %p879_p13 = pneg %p878_p10 }
 0x3af   : > { %p884_p1 = pnand %p883_p11, %p879_p13 }
 0x3b1   : > { %887 = shalt.err (!%p884_p1)
}
 0x3b2   : > { %686 = dma.vmem_to_hbm [thread:$0]  (%p1313_p4), %s1214_s13, 128, %s1212_s8, %s513_s24  }
 0x3b3 PF: > { %s1314_s17 = sld [smem:[#allocation12_spill]]  ;;  %p703_p12 = scmp.ge.s32.totalorder %s986_s28, 2 }
 0x3b4   : > { %s1315_s30 = sld [smem:[#allocation16_spill]] }
 0x3b9   : > { %s540_s12 = sand.u32 1, %s1314_s17  }
 0x3ba   : > { %p1316_p0 = scmp.ne.s32.totalorder %s1315_s30, 0  ;;  %s541_s26 = scalar_lea.sflag [#allocation5], %s540_s12 }
 0x3bc   : > { %p697_p5 = pnand %p703_p12, %p1316_p0 }
 0x3be   : > { %p698_p7 = pneg %p697_p5 }
 0x3c0   : > { %941 = dma.done.wait (%p698_p7), %s541_s26, 128  }
 0x3c1   : > { %943 = vsyncadd (%p698_p7), %s541_s26, 4294967168  ;;  %s22_s28 = sadd.s32 1, %s986_s28   ;;  %s1317_s10 = smov %s1152_s18 }
 0x3c2   : > { %p19_p8 = scmp.ge.s32.totalorder %s22_s28, 10   ;;  %s1318_s24 = sld [smem:[#allocation14_spill]] }
 0x3c3   : > { %s1319_s26 = sld [smem:[#allocation17_spill]]  ;;  %s1320_s18 = smov %s950_s19 }
 0x3c4   : > { %s1321_s19 = smov %s954_s20  ;;  %s1322_s20 = smov %s1317_s10 }
 0x3c5   : > { %s1323_s21 = smov %s962_s22  ;;  %s1324_s22 = smov %s966_s23 }
 0x3c6   : > { %s1325_s23 = smov %s1149_s9  ;;  %s1326_s25 = smov %s982_s27 }
 0x3c7   : > { %s1327_s27 = smov %s1333_s29  ;;  %21 = sbr.rel (!%p19_p8) target bundleno = 14 (0xe), region = 102 }
 0x3cc   :  { %546 = vsyncpa [#allocation4], 1 }
 0x3cd   :  { %548 = vsyncpa [#allocation4 + $0x1], 1 }
 0x3ce   :  { %549 = vsyncpa [#allocation7], 1 }
 0x3cf   :  { %550 = vsyncpa [#allocation5], 1 }
 0x3d0   :  { %552 = vsyncpa [#allocation5 + $0x1], 1 }

// kernel: tpu_custom_call.1
= control target key start
LH: loop header
LB: loop body
LE: loop exit
PB: predicated region body
PF: predicated region fallthrough
CT: control target
= control target key end

     0   :  { %s1277_s0 = inlined_call_operand.hbm [shape: f32[2,8,32], index: 0, kind: input, shape index: {}]   ;;  %s1278_s1 = inlined_call_operand.hbm [shape: f32[32,128], index: 1, kind: input, shape index: {}]   ;;  %s1279_s2 = inlined_call_operand.vmem [shape: f32[1,128], index: 2, kind: input, shape index: {}]   ;;  %s1280_s3 = inlined_call_operand.vmem [shape: f32[1,128], index: 3, kind: input, shape index: {}]   ;;  %s1281_s4 = inlined_call_operand.vmem [shape: f32[1,128], index: 4, kind: input, shape index: {}]   ;;  %s1282_s5 = inlined_call_operand.hbm [shape: f32[2,4,8,8], index: 5, kind: output, shape index: {}]  }
   0x1   :  { %1291 = sst [smem:[#allocation18_spill]] %s1278_s1 }
   0x2   :  { %1292 = sst [smem:[#allocation19_spill]] %s1281_s4 }
   0x3   :  { %1293 = sst [smem:[#allocation20_spill]] %s1282_s5 }
   0x4   :  { %10 = vsyncpa [#allocation4], 0 }
   0x5   :  { %12 = vsyncpa [#allocation4 + $0x1], 0 }
   0x6   :  { %13 = vsyncpa [#allocation7], 0 }
   0x7   :  { %14 = vsyncpa [#allocation5], 0 }
   0x8   :  { %16 = vsyncpa [#allocation5 + $0x1], 0  ;;  %s1034_s18 = smov 0   ;;  %s1036_s19 = smov 0  }
   0x9   :  { %s1038_s20 = smov 0   ;;  %s1040_s21 = smov 0  }
   0xa   :  { %s1042_s22 = smov 0   ;;  %s1044_s23 = smov 0  }
   0xb   :  { %s1046_s24 = smov 0   ;;  %s1048_s25 = smov 0  }
   0xc   :  { %s1050_s26 = smov 0   ;;  %s1052_s27 = smov 0  }
   0xd   :  { %s1054_s28 = smov 0  }
   0xe LB: > { %1294 = sst [smem:[#allocation12_spill]] %s946_s18  ;;  %s627_s29 = sadd.s32 4294967295, %s986_s28   ;;  %s986_s28 = sphi %s1054_s28, %s22_s28   ;;  %s982_s27 = sphi %s1052_s27, %s1327_s27   ;;  %s978_s26 = sphi %s1050_s26, %s1319_s26   ;;  %s974_s25 = sphi %s1048_s25, %s1326_s25   ;;  %s970_s24 = sphi %s1046_s24, %s1318_s24   ;;  %s966_s23 = sphi %s1044_s23, %s1325_s23   ;;  %s962_s22 = sphi %s1042_s22, %s1324_s22   ;;  %s958_s21 = sphi %s1040_s21, %s1323_s21   ;;  %s954_s20 = sphi %s1038_s20, %s1322_s20   ;;  %s950_s19 = sphi %s1036_s19, %s1321_s19   ;;  %s946_s18 = sphi %s1034_s18, %s1320_s18  }
   0xf   : > { %1295 = sst [smem:[#allocation13_spill]] %s974_s25  ;;  %s628_s30 = sadd.s32 4294967294, %s986_s28  }
  0x10   : > { %1296 = sst [smem:[#allocation14_spill]] %s978_s26  ;;  %p54_p0 = scmp.ne.s32.totalorder %s962_s22, %s958_s21 }
  0x11   : > { %p1090_p1 = scmp.eq.s32.totalorder %s627_s29, 0  ;;  %p163_p2 = scmp.ne.s32.totalorder %s954_s20, %s950_s19 }
  0x12   : > { %p164_p3 = scmp.eq.s32.totalorder %s627_s29, 7  ;;  %p169_p5 = scmp.ne.s32.totalorder %s950_s19, %s946_s18 }
  0x13   : > { %p1098_p4 = por %p1090_p1, %p54_p0  ;;  %p170_p7 = scmp.eq.s32.totalorder %s628_s30, 7 }
  0x14   : > { %p1104_p6 = por %p164_p3, %p163_p2  ;;  %p629_p8 = scmp.ge.s32.totalorder %s986_s28, 1 }
  0x15   : > { %p177_p9 = scmp.lt.s32.totalorder %s986_s28, 9  ;;  %p1110_p10 = por %p170_p7, %p169_p5 }
  0x16   : > { %s1299_s8 = scalar_select %p1104_p6, 1, 0 }
  0x17   : > { %s1301_s9 = scalar_select %p1110_p10, 1, 0 }
  0x18   : > { %1300 = sst [smem:[#allocation15_spill]] %s1299_s8  ;;  %p1114_p11 = pnand %p629_p8, %p177_p9 }
  0x19   : > { %1302 = sst [smem:[#allocation16_spill]] %s1301_s9  ;;  %s988_s11 = smov [#allocation6]  }
  0x1a   : > { %s189_s12 = sshll.u32 %s988_s11, 4  ;;  %p688_p12 = pneg %p1114_p11  ;;  %s190_s12 = int_to_ptr.vmem [resolvable:$true] %s189_s12 }
  0x1b   : > { %s819_s13 = scalar_lea.vmem %s190_s12, 512  ;;  %p827_p7 = scmp.lt.s32.totalorder %s190_s12, %s190_s12 }
  0x1c   : > { %p689_p13 = pnand %p688_p12, %p1090_p1  ;;  %p820_p2 = scmp.ne.s32.totalorder %s190_s12, %s819_s13 }
  0x1d   : > { %p828_p6 = scmp.lt.s32.totalorder %s819_s13, %s819_s13 }
  0x1e   : > { %p810_p0 = pneg %p689_p13 }
  0x1f   : > { %p829_p10 = por %p828_p6, %p827_p7 }
  0x20   : > { %p822_p3 = pnand %p820_p2, %p810_p0 }
  0x22   : > { %p823_p5 = pneg %p822_p3 }
  0x24   : > { %p830_p8 = pnand %p829_p10, %p823_p5 }
  0x26   : > { %833 = shalt.err (!%p830_p8)
}
  0x27   : > { %s989_s14 = smov 128   ;;  %s990_s15 = smov 8  }
  0x28   : > { %s1304_s1 = sld [smem:[#allocation18_spill]]  ;;  %s31_s21 = sadd.s32 1, %s978_s26 }
  0x29   : > { %s34_s29 = sadd.s32 1, %s982_s27  ;;  %p32_p6 = scmp.ge.s32.totalorder %s31_s21, 4 }
  0x2a   : > { %s41_s30 = sadd.s32 1, %s966_s23  ;;  %p48_p9 = scmp.ne.s32.totalorder %s966_s23, %s962_s22 }
  0x2b   : > { %p49_p10 = scmp.eq.s32.totalorder %s986_s28, 0  ;;  %s1329_s21 = smov (%p32_p6, %s31_s21), 0 }
  0x2c   : > { %1305 = sst [smem:[#allocation17_spill]] %s1329_s21  ;;  %s1331_s29 = smov (!%p32_p6, %s34_s29), %s982_s27 }
  0x2d   : > { %p1134_p12 = por %p49_p10, %p48_p9  ;;  %s149_s13 = ssub.s32 %s978_s26, %s1329_s21 }
  0x2e   : > { %691 = dma.hbm_to_vmem [thread:$0]  (!%p689_p13), %s1304_s1, 512, %s190_s12, [#allocation7], %s989_s14, %s989_s14, %s990_s15  }
  0x2f   : > { %p36_p13 = scmp.ge.s32.totalorder %s1331_s29, 2  ;;  %s153_s12 = sadd.s32 1, %s954_s20 }
  0x30   : > { %p701_p0 = scmp.lt.s32.totalorder %s986_s28, 8  ;;  %s212_s14 = sand.u32 1, %s966_s23  }
  0x31   : > { %s1333_s29 = smov (%p36_p13, %s1331_s29), 0  ;;  %s632_s15 = sshll.u32 %s212_s14, 3 }
  0x32   : > { %s38_s16 = ssub.s32 %s982_s27, %s1333_s29  ;;  %s633_s1 = sshll.u32 %s982_s27, 7 }
  0x33   : > { %p39_p2 = scmp.eq.s32.totalorder %s38_s16, 0  ;;  %s150_s17 = sor.u32 %s149_s13, %s38_s16 }
  0x34   : > { %p151_p3 = scmp.eq.s32.totalorder %s150_s17, 0  ;;  %s221_s5 = scalar_lea.hbm %s1277_s0, %s633_s1 }
  0x35   : > { %s1149_s9 = scalar_select %p39_p2, %s966_s23, %s41_s30  }
  0x36   : > { %s1152_s18 = scalar_select %p151_p3, %s954_s20, %s153_s12  }
  0x37   : > { %s216_s8 = scalar_lea.vmem [#allocation3], %s632_s15  ;;  %p1161_p5 = pnand %p701_p0, %p1134_p12 }
  0x38   : > { %s223_s25 = sshll.u32 %s216_s8, 4  ;;  %s213_s13 = scalar_lea.sflag [#allocation4], %s212_s14  ;;  %s224_s25 = int_to_ptr.vmem [resolvable:$true] %s223_s25 }
  0x39   : > { %p836_p7 = pneg %p1161_p5  ;;  %s847_s30 = scalar_lea.vmem %s224_s25, 128 }
  0x3a   : > { %p848_p8 = scmp.ne.s32.totalorder %s224_s25, %s847_s30  ;;  %s991_s12 = smov [#allocation3]  }
  0x3b   : > { %s852_s26 = sshll.u32 %s991_s12, 4  ;;  %s853_s26 = int_to_ptr.vmem [resolvable:$false] %s852_s26 }
  0x3c   : > { %p850_p6 = pnand %p848_p8, %p836_p7  ;;  %s854_s1 = scalar_lea.vmem %s853_s26, 256 }
  0x3d   : > { %p855_p10 = scmp.lt.s32.totalorder %s224_s25, %s853_s26  ;;  %p856_p13 = scmp.lt.s32.totalorder %s854_s1, %s847_s30 }
  0x3e   : > { %p851_p9 = pneg %p850_p6 }
  0x3f   : > { %p857_p2 = por %p856_p13, %p855_p10 }
  0x41   : > { %p858_p3 = pnand %p857_p2, %p851_p9 }
  0x43   : > { %861 = shalt.err (!%p858_p3)
}
  0x44   : > { %695 = dma.hbm_to_vmem [thread:$0]  (!%p1161_p5), %s221_s5, 128, %s224_s25, %s213_s13  }
  0x45   : > { %232 = sbr.rel (%p1114_p11) target bundleno = 947 (0x3b3), region = 40  ;;  %s234_s8 = sand.u32 (!%p1114_p11), 1, %s962_s22  }
  0x46   : > { %s635_s21 = sshll.u32 (!%p1114_p11), %s234_s8, 3  ;;  %s235_s11 = scalar_lea.sflag (!%p1114_p11), [#allocation4], %s234_s8 }
  0x47   : > { %s238_s14 = scalar_lea.vmem (!%p1114_p11), [#allocation3], %s635_s21 }
  0x4a   : > { %933 = dma.done.wait (%p1098_p4), %s235_s11, 128  }
  0x4b   : > { %935 = vsyncadd (%p1098_p4), %s235_s11, 4294967168 }
  0x4c   : > { %937 = dma.done.wait (%p1090_p1), [#allocation7], 512  }
  0x4d   : > { %939 = vsyncadd (%p1090_p1), [#allocation7], 4294966784  ;;  %s266_s4 = sand.u32 1, %s950_s19   ;;  %p638_p11 = scmp.ne.s32.totalorder %s970_s24, 0 }
  0x4e   : > { %s1183_s5 = sshll.u32 %s266_s4, 3  ;;  %s1308_s13 = sld [smem:[#allocation19_spill]] (!%p638_p11) }
  0x4f   : > { %s268_s25 = scalar_lea.vmem [#allocation8], %s1183_s5  ;;  %272 = sbr.rel (%p638_p11) target bundleno = 730 (0x2da), region = 52 }
  0x50   : > { %s994_s30 = smov (!%p638_p11), 80   ;;  %s995_s12 = smov (!%p638_p11), 112  }
  0x51   : > { %s996_s26 = smov (!%p638_p11), 96   ;;  %s997_s1 = smov (!%p638_p11), 64  }
  0x52   : > { %s998_s8 = smov (!%p638_p11), 48   ;;  %s999_s21 = smov (!%p638_p11), 32  }
  0x53   : > { %s1000_s11 = smov (!%p638_p11), 16  }
  0x54   : > { %v277_v0 = vld [vmem:[#allocation6 + $0x18] sm:$0xff]  ;;  %v992_v1 = vmov 0.0   ;;  %v276_v2 = vld [vmem:[#allocation6 + $0x10] sm:$0xff]  ;;  %vm993_vm0 = vmmov 0   ;;  %v275_v3 = vld [vmem:[#allocation6 + $0x8] sm:$0xff]  ;;  %vm285_vm1 = vcmask 261120  }
  0x55   : > { %664 = vmatprep.subr.mxu0 %v992_v1  ;;  %672 = vmatprep.mubr.msk.f32.mxu0 %vm993_vm0, %v992_v1  ;;  %v274_v4 = vld [vmem:[#allocation6] sm:$0xff]  ;;  %v273_v5 = vld [vmem:[%s238_s14] sm:$0xff]  ;;  %vm387_vm2 = vcmask 130048  }
  0x56   : > { %665 = vmatpush3.msra.mxu0 %v277_v0  ;;  %v639_v6 = vld [vmem:[%s1279_s2] ss:$0 sm:$0xff] }
  0x57   : > { %666 = vmatprep.subr.mxu0 %v992_v1  ;;  %v641_v18 = vld [vmem:[%s1280_s3] ss:$0 sm:$0xff] }
  0x58   : > { %667 = vmatpush3.msra.mxu0 %v276_v2  ;;  %v642_v20 = vld [vmem:[%s1308_s13] ss:$0 sm:$0xff] }
  0x59   : > { %668 = vmatprep.subr.mxu0 %v992_v1 }
  0x5a   : > { %669 = vmatpush3.msra.mxu0 %v275_v3 }
  0x5b   : > { %670 = vmatprep.subr.mxu0 %v992_v1 }
  0x5c   : > { %671 = vmatpush3.msra.mxu0 %v274_v4 }
  0x5d   : > { %673 = vmatmul.mubr.msk.f32.vlgmr.msra.gmra.mxu0 %vm285_vm1, %v273_v5 }
 0x11d   : > { %v355_v7 = vpop.f32.mrf.mxu0 }
 0x11e   : > { %v356_v8 = vadd.f32 %v639_v6, %v355_v7 }
 0x11f   : > { %v674_v9 = vpop.f32.mrf.mxu0 }
 0x120   : > { %359 = vadd.xlane.f32.xlu0 %v356_v8 }
 0x1a9   : > { %v360_v10 = vpop.xlane.xlu0 %359 }
 0x1aa   : > { %v362_v11 = vmul.f32 0.0078125, %v360_v10 }
 0x1ac   : > { %v363_v12 = vsub.f32 %v356_v8, %v362_v11 }
 0x1ae   : > { %v364_v13 = vmul.f32 %v363_v12, %v363_v12 }
 0x1b0   : > { %365 = vadd.xlane.f32.xlu0 %v364_v13 }
 0x239   : > { %v366_v14 = vpop.xlane.xlu0 %365 }
 0x23a   : > { %v367_v15 = vmul.f32 0.0078125, %v366_v14 }
 0x23c   : > { %v368_v16 = vadd.f32 1e-05, %v367_v15 }
 0x23e   : > { %806 = vrsqrt.f32 %v368_v16 }
 0x24b   : > { %v807_v17 = vpop.eup %806 }
 0x24c   : > { %v370_v19 = vmul.f32 %v807_v17, %v363_v12 }
 0x24e   : > { %v378_v21 = vmul.f32 %v641_v18, %v370_v19 }
 0x250   : > { %v386_v22 = vadd.f32 %v642_v20, %v378_v21 }
 0x252   : > { %400 = vrot.lane.b32.xlu0 %v386_v22, %s994_s30  ;;  %390 = vrot.lane.b32.xlu1 %v386_v22, %s995_s12  ;;  %388 = vst.msk [vmem:[#allocation2] sm:$0xff] %vm387_vm2, %v386_v22 }
 0x256   : > { %395 = vrot.lane.b32.xlu1 %v386_v22, %s996_s26 }
 0x25a   : > { %405 = vrot.lane.b32.xlu1 %v386_v22, %s997_s1 }
 0x25e   : > { %410 = vrot.lane.b32.xlu1 %v386_v22, %s998_s8 }
 0x262   : > { %415 = vrot.lane.b32.xlu1 %v386_v22, %s999_s21 }
 0x266   : > { %420 = vrot.lane.b32.xlu1 %v386_v22, %s1000_s11 }
 0x2c4   : > { %v401_v23 = vpop.permute.xlu0 %400  ;;  %v391_v24 = vpop.permute.xlu1 %390 }
 0x2c5   : > { %404 = vst.msk [vmem:[#allocation2 + $0x18] sm:$0xff] %vm387_vm2, %v401_v23  ;;  %394 = vst.msk [vmem:[#allocation2 + $0x8] sm:$0xff] %vm387_vm2, %v391_v24 }
 0x2c8   : > { %v396_v25 = vpop.permute.xlu1 %395 }
 0x2c9   : > { %399 = vst.msk [vmem:[#allocation2 + $0x10] sm:$0xff] %vm387_vm2, %v396_v25 }
 0x2cc   : > { %v406_v26 = vpop.permute.xlu1 %405 }
 0x2cd   : > { %409 = vst.msk [vmem:[#allocation2 + $0x20] sm:$0xff] %vm387_vm2, %v406_v26 }
 0x2d0   : > { %v411_v27 = vpop.permute.xlu1 %410 }
 0x2d1   : > { %414 = vst.msk [vmem:[#allocation2 + $0x28] sm:$0xff] %vm387_vm2, %v411_v27 }
 0x2d4   : > { %v416_v28 = vpop.permute.xlu1 %415 }
 0x2d5   : > { %419 = vst.msk [vmem:[#allocation2 + $0x30] sm:$0xff] %vm387_vm2, %v416_v28 }
 0x2d8   : > { %v421_v29 = vpop.permute.xlu1 %420 }
 0x2d9   : > { %424 = vst.msk [vmem:[#allocation2 + $0x38] sm:$0xff] %vm387_vm2, %v421_v29 }
 0x2da PF: > { %s1309_s14 = sld [smem:[#allocation13_spill]]  ;;  %s655_s6 = sshll.u32 %s970_s24, 4  ;;  %vm433_vm3 = vcmask 130048   ;;  %v1001_v30 = vmov 0.0   ;;  %vm1002_vm4 = vmmov 0   ;;  %vm510_vm5 = vcmask 64512  }
 0x2db   : > { %675 = vmatprep.subr.mxu0 %v1001_v30  ;;  %677 = vmatprep.mubr.msk.f32.mxu0 %vm1002_vm4, %v1001_v30  ;;  %s427_s7 = scalar_lea.vmem [#allocation2], %s655_s6  ;;  %s1310_s10 = sld [smem:[#allocation15_spill]] }
 0x2dc   : > { %s528_s13 = sshll.u32 %s268_s25, 4  ;;  %s1311_s26 = sld [smem:[#allocation20_spill]]  ;;  %s1214_s13 = int_to_ptr.vmem [resolvable:$true] %s528_s13 }
 0x2dd   : > { %s862_s21 = scalar_lea.vmem %s1214_s13, 128  ;;  %s1003_s11 = smov [#allocation8]  }
 0x2de   : > { %p863_p1 = scmp.ne.s32.totalorder %s1214_s13, %s862_s21 }
 0x2e0   : > { %v647_v31 = vld [vmem:[%s427_s7 + $0x8] sm:$0xff]  ;;  %v428_v32 = vld [vmem:[%s427_s7] sm:$0xff]  ;;  %s651_s15 = sshll.u32 %s1309_s14, 2  ;;  %s866_s14 = sshll.u32 %s1003_s11, 4  ;;  %s867_s14 = int_to_ptr.vmem [resolvable:$false] %s866_s14 }
 0x2e1   : > { %676 = vmatpush3.xpose.msk.msra.mxu0 %vm433_vm3, %v647_v31  ;;  %s524_s16 = sadd.s32 %s970_s24, %s651_s15  ;;  %s513_s24 = scalar_lea.sflag [#allocation5], %s266_s4 }
 0x2e2   : > { %s652_s17 = sshll.u32 %s524_s16, 7  ;;  %s1312_s1 = smov %s1311_s26 }
 0x2e3   : > { %s1212_s8 = scalar_lea.hbm %s1311_s26, %s652_s17  ;;  %p1313_p4 = scmp.ne.s32.totalorder %s1310_s10, 0 }
 0x2e4   : > { %678 = vmatmul.mubr.msk.f32.vlgmr.msra.gmra.mxu0 %vm433_vm3, %v428_v32  ;;  %s868_s6 = scalar_lea.vmem %s867_s14, 256  ;;  %p869_p5 = scmp.lt.s32.totalorder %s1214_s13, %s867_s14 }
 0x2e5   : > { %p864_p12 = pnand %p863_p1, %p1313_p4  ;;  %p870_p7 = scmp.lt.s32.totalorder %s868_s6, %s862_s21 }
 0x2e7   : > { %p865_p0 = pneg %p864_p12  ;;  %p871_p8 = por %p870_p7, %p869_p5 }
 0x2e9   : > { %p872_p6 = pnand %p871_p8, %p865_p0 }
 0x3a4   : > { %v506_v33 = vpop.f32.mrf.mxu0 }
 0x3a5   : > { %511 = vst.msk [vmem:[%s268_s25] sm:$0xff] %vm510_vm5, %v506_v33 }
 0x3a6   : > { %v679_v34 = vpop.f32.mrf.mxu0 }
 0x3a7   : > { %875 = shalt.err (!%p872_p6)
}
 0x3a8   : > { %s876_s5 = scalar_lea.hbm %s1212_s8, 128  ;;  %s880_s7 = scalar_lea.hbm %s1312_s1, 1024 }
 0x3a9   : > { %p877_p9 = scmp.ne.s32.totalorder %s1212_s8, %s876_s5  ;;  %p881_p2 = scmp.lt.s32.totalorder %s1212_s8, %s1312_s1 }
 0x3aa   : > { %p882_p3 = scmp.lt.s32.totalorder %s880_s7, %s876_s5 }
 0x3ab   : > { %p878_p10 = pnand %p877_p9, %p1313_p4 }
 0x3ac   : > { %p883_p11 = por %p882_p3, %p881_p2 }
 0x3ad   : > { %p879_p13 = pneg %p878_p10 }
 0x3af   : > { %p884_p1 = pnand %p883_p11, %p879_p13 }
 0x3b1   : > { %887 = shalt.err (!%p884_p1)
}
 0x3b2   : > { %686 = dma.vmem_to_hbm [thread:$0]  (%p1313_p4), %s1214_s13, 128, %s1212_s8, %s513_s24  }
 0x3b3 PF: > { %s1314_s17 = sld [smem:[#allocation12_spill]]  ;;  %p703_p12 = scmp.ge.s32.totalorder %s986_s28, 2 }
 0x3b4   : > { %s1315_s30 = sld [smem:[#allocation16_spill]] }
 0x3b9   : > { %s540_s12 = sand.u32 1, %s1314_s17  }
 0x3ba   : > { %p1316_p0 = scmp.ne.s32.totalorder %s1315_s30, 0  ;;  %s541_s26 = scalar_lea.sflag [#allocation5], %s540_s12 }
 0x3bc   : > { %p697_p5 = pnand %p703_p12, %p1316_p0 }
 0x3be   : > { %p698_p7 = pneg %p697_p5 }
 0x3c0   : > { %941 = dma.done.wait (%p698_p7), %s541_s26, 128  }
 0x3c1   : > { %943 = vsyncadd (%p698_p7), %s541_s26, 4294967168  ;;  %s22_s28 = sadd.s32 1, %s986_s28   ;;  %s1317_s10 = smov %s1152_s18 }
 0x3c2   : > { %p19_p8 = scmp.ge.s32.totalorder %s22_s28, 10   ;;  %s1318_s24 = sld [smem:[#allocation14_spill]] }
 0x3c3   : > { %s1319_s26 = sld [smem:[#allocation17_spill]]  ;;  %s1320_s18 = smov %s950_s19 }
 0x3c4   : > { %s1321_s19 = smov %s954_s20  ;;  %s1322_s20 = smov %s1317_s10 }
 0x3c5   : > { %s1323_s21 = smov %s962_s22  ;;  %s1324_s22 = smov %s966_s23 }
 0x3c6   : > { %s1325_s23 = smov %s1149_s9  ;;  %s1326_s25 = smov %s982_s27 }
 0x3c7   : > { %s1327_s27 = smov %s1333_s29  ;;  %21 = sbr.rel (!%p19_p8) target bundleno = 14 (0xe), region = 102 }
 0x3cc   :  { %546 = vsyncpa [#allocation4], 1 }
 0x3cd   :  { %548 = vsyncpa [#allocation4 + $0x1], 1 }
 0x3ce   :  { %549 = vsyncpa [#allocation7], 1 }
 0x3cf   :  { %550 = vsyncpa [#allocation5], 1 }
 0x3d0   :  { %552 = vsyncpa [#allocation5 + $0x1], 1 }

</bundles_post_ra>
